<compile_context>
chip_gen: v5e
topology: v5e:2x2
jax: 0.10.0
libtpu: 0.0.40
codegen_flags: <defaults>
</compile_context>

<pallas_src>
import jax
import jax.numpy as jnp
from jax import lax
from jax.experimental import pallas as pl
from jax.experimental.pallas import tpu as pltpu


def _cam_kernel(gamma_ref, x_ref, o_ref):
    """Channel attention for one batch element.

    x_ref / o_ref : (C, N) with N = H*W (batch dim squeezed by BlockSpec)
    gamma_ref     : (1, 1) f32
    """
    x = x_ref[...].astype(jnp.float32)                              # (C, N)

    # energy[i, j] = <x_i, x_j>  == bmm(proj_query, proj_key). Contract over the
    # spatial axis of both operands; no explicit transpose needed (MXU).
    energy = lax.dot_general(
        x, x, dimension_numbers=(((1,), (1,)), ((), ())),
        preferred_element_type=jnp.float32)                          # (C, C)

    # energy_new = rowmax(energy) - energy, then softmax over the last axis
    # (numerically stable: subtract the row max of energy_new before exp).
    energy_new = jnp.max(energy, axis=-1, keepdims=True) - energy
    m = jnp.max(energy_new, axis=-1, keepdims=True)
    e = jnp.exp(energy_new - m)
    attn = e / jnp.sum(e, axis=-1, keepdims=True)                    # (C, C)

    # out = bmm(attention, proj_value)
    out = jnp.dot(attn, x, preferred_element_type=jnp.float32)       # (C, N)

    gamma = gamma_ref[0, 0]
    o_ref[...] = (gamma * out + x).astype(o_ref.dtype)


def cam_forward(x, gamma):
    """Pallas equivalent of CAM_Module.forward.

    x: (B, C, H, W) feature maps; gamma: scalar parameter.
    Returns (B, C, H, W) = gamma * channel_attention(x) + x.
    """
    B, C, H, W = x.shape
    N = H * W
    # Free reshape in HBM (contiguous); makes the last (lane) axis H*W-wide.
    x2 = x.reshape(B, C, N)
    gamma_arr = jnp.asarray(gamma, jnp.float32).reshape(1, 1)

    # TODO(synk): for very large C*H*W (tile > a few MiB), add a channel-tile
    # grid axis over the query/output rows to stay inside the v7x VMEM budget.
    out = pl.pallas_call(
        _cam_kernel,
        out_shape=jax.ShapeDtypeStruct((B, C, N), x.dtype),
        grid_spec=pltpu.PrefetchScalarGridSpec(
            num_scalar_prefetch=0,
            grid=(B,),
            in_specs=[
                # gamma: tiny resident tile (same block every step)
                pl.BlockSpec((1, 1), lambda b: (0, 0)),
                # one full (C, H*W) batch element per grid step
                pl.BlockSpec((None, C, N), lambda b: (b, 0, 0)),
            ],
            out_specs=pl.BlockSpec((None, C, N), lambda b: (b, 0, 0)),
        ),
        compiler_params=pltpu.CompilerParams(
            # batch elements are independent -> megacore sharding on v7x
            dimension_semantics=("parallel",),
        ),
    )(gamma_arr, x2)
    return out.reshape(B, C, H, W)


def _reference(x, gamma):
    """Pure-JAX reference mirroring the PyTorch module."""
    B, C, H, W = x.shape
    q = x.reshape(B, C, H * W).astype(jnp.float32)
    energy = jnp.einsum("bcn,bdn->bcd", q, q)
    energy_new = jnp.max(energy, axis=-1, keepdims=True) - energy
    attn = jax.nn.softmax(energy_new, axis=-1)
    out = jnp.einsum("bcd,bdn->bcn", attn, q).reshape(B, C, H, W)
    return (gamma * out + x.astype(jnp.float32)).astype(x.dtype)


if __name__ == "__main__":
    key = jax.random.PRNGKey(0)
    B, C, H, W = 2, 4, 16, 16
    x = jax.random.normal(key, (B, C, H, W), dtype=jnp.float32)

    # gamma is initialized to 0 in the module; use a nonzero value so the
    # attention path is actually exercised, plus the 0 (init) case.
    for gamma in (0.5, 0.0):
        out = cam_forward(x, gamma)
        out = jax.block_until_ready(out)
        ref = _reference(x, gamma)
        assert out.shape == (B, C, H, W)
        assert jnp.allclose(out, ref, atol=1e-4, rtol=1e-4), (
            float(jnp.max(jnp.abs(out - ref)))
        )

    print("KERNEL_OK")
</pallas_src>

<mosaic_0001>
module attributes {stable_mosaic.version = 11 : i64} {
  func.func @_cam_kernel(%arg0: i32, %arg1: memref<1x1xf32, #tpu.memory_space<vmem>>, %arg2: memref<1x4x256xf32, #tpu.memory_space<vmem>>, %arg3: memref<1x4x256xf32, #tpu.memory_space<vmem>>) attributes {dimension_semantics = [#tpu.dimension_semantics<parallel>], iteration_bounds = array<i64: 2>, scalar_prefetch = 0 : i64, scratch_operands = 0 : i64, tpu.core_type = #tpu.core_type<tc>, window_params = [{pipeline_mode = #tpu.pipeline_mode<synchronous>, transform_indices = @transform_0, window_bounds = array<i64: 1, 1>}, {transform_indices = @transform_1, window_bounds = array<i64: 1, 4, 256>}, {transform_indices = @transform_2, window_bounds = array<i64: 1, 4, 256>}]} {
    %c0 = arith.constant 0 : index
    %c0_0 = arith.constant 0 : index
    %c0_1 = arith.constant 0 : index
    %0 = vector.load %arg2[%c0, %c0_0, %c0_1] : memref<1x4x256xf32, #tpu.memory_space<vmem>>, vector<1x4x256xf32>
    %1 = vector.shape_cast %0 : vector<1x4x256xf32> to vector<4x256xf32>
    %cst = arith.constant dense<0.000000e+00> : vector<4x4xf32>
    %2 = tpu.matmul %1, %1, %cst {dimension_numbers = #tpu.dot_dimension_numbers<[1], [1], [0], [0], [0, 0, 1, 0], [], []>} : vector<4x256xf32>, vector<4x256xf32>, vector<4x4xf32> -> vector<4x4xf32>
    %cst_2 = arith.constant dense<0xFF800000> : vector<4xf32>
    %3 = vector.multi_reduction <maximumf>, %2, %cst_2 [1] : vector<4x4xf32> to vector<4xf32>
    %4 = vector.shape_cast %3 : vector<4xf32> to vector<4x1xf32>
    %5 = vector.broadcast %4 : vector<4x1xf32> to vector<4x4xf32>
    %6 = arith.subf %5, %2 : vector<4x4xf32>
    %cst_3 = arith.constant dense<0xFF800000> : vector<4xf32>
    %7 = vector.multi_reduction <maximumf>, %6, %cst_3 [1] : vector<4x4xf32> to vector<4xf32>
    %8 = vector.shape_cast %7 : vector<4xf32> to vector<4x1xf32>
    %9 = vector.broadcast %8 : vector<4x1xf32> to vector<4x4xf32>
    %10 = arith.subf %6, %9 : vector<4x4xf32>
    %11 = math.exp %10 : vector<4x4xf32>
    %cst_4 = arith.constant dense<0.000000e+00> : vector<4xf32>
    %12 = vector.multi_reduction <add>, %11, %cst_4 [1] : vector<4x4xf32> to vector<4xf32>
    %13 = vector.shape_cast %12 : vector<4xf32> to vector<4x1xf32>
    %14 = vector.broadcast %13 : vector<4x1xf32> to vector<4x4xf32>
    %15 = arith.divf %11, %14 : vector<4x4xf32>
    %cst_5 = arith.constant dense<0.000000e+00> : vector<4x256xf32>
    %16 = tpu.matmul %15, %1, %cst_5 {dimension_numbers = #tpu.dot_dimension_numbers<[1], [0], [0], [1], [0, 0, 1, 1], [], []>} : vector<4x4xf32>, vector<4x256xf32>, vector<4x256xf32> -> vector<4x256xf32>
    %c0_6 = arith.constant 0 : index
    %c0_7 = arith.constant 0 : index
    %17 = vector.load %arg1[%c0_6, %c0_7] : memref<1x1xf32, #tpu.memory_space<vmem>>, vector<1x1xf32>
    %18 = vector.extract %17[0, 0] : f32 from vector<1x1xf32>
    %19 = vector.broadcast %18 : f32 to vector<4x256xf32>
    %20 = arith.mulf %19, %16 : vector<4x256xf32>
    %21 = arith.addf %20, %1 : vector<4x256xf32>
    %c0_8 = arith.constant 0 : index
    %c0_9 = arith.constant 0 : index
    %c0_10 = arith.constant 0 : index
    %22 = vector.load %arg3[%c0_8, %c0_9, %c0_10] : memref<1x4x256xf32, #tpu.memory_space<vmem>>, vector<1x4x256xf32>
    %23 = vector.shape_cast %22 : vector<1x4x256xf32> to vector<4x256xf32>
    %24 = vector.shape_cast %21 : vector<4x256xf32> to vector<1x4x256xf32>
    tpu.vector_store %arg3[%c0_8, %c0_9, %c0_10], %24 {strides = array<i32>} : memref<1x4x256xf32, #tpu.memory_space<vmem>>, vector<1x4x256xf32>,
    return
  }
  func.func @transform_0(%arg0: i32) -> (i32, i32) {
    %c0_i32 = arith.constant 0 : i32
    %c0_i32_0 = arith.constant 0 : i32
    %c0_i32_1 = arith.constant 0 : i32
    return %c0_i32, %c0_i32_0 : i32, i32
  }
  func.func @transform_1(%arg0: i32) -> (i32, i32, i32) {
    %c0_i32 = arith.constant 0 : i32
    %c0_i32_0 = arith.constant 0 : i32
    %c0_i32_1 = arith.constant 0 : i32
    return %arg0, %c0_i32, %c0_i32_0 : i32, i32, i32
  }
  func.func @transform_2(%arg0: i32) -> (i32, i32, i32) {
    %c0_i32 = arith.constant 0 : i32
    %c0_i32_0 = arith.constant 0 : i32
    %c0_i32_1 = arith.constant 0 : i32
    return %arg0, %c0_i32, %c0_i32_0 : i32, i32, i32
  }
}

</mosaic_0001>

<bundles_post_ra>
// kernel: tpu_custom_call.1
= control target key start
LH: loop header
LB: loop body
LE: loop exit
PB: predicated region body
PF: predicated region fallthrough
CT: control target
= control target key end

     0   :  { %s724_s0 = inlined_call_operand.<no memory space> [shape: f32[1,1], index: 0, kind: input, shape index: {}]   ;;  %s725_s1 = inlined_call_operand.hbm [shape: f32[2,4,256], index: 1, kind: input, shape index: {}]   ;;  %s726_s2 = inlined_call_operand.hbm [shape: f32[2,4,256], index: 2, kind: output, shape index: {}]  }
   0x1   :  { %v7_v0 = vstv %s724_s0 }
   0x2   :  { %8 = vst [vmem:[#allocation2] sm:$0x1] %v7_v0 }
   0x3   :  { %9 = vsyncpa [#allocation4], 0 }
   0x4   :  { %11 = vsyncpa [#allocation4 + $0x1], 0 }
   0x5   :  { %12 = vsyncpa [#allocation5], 0 }
   0x6   :  { %14 = vsyncpa [#allocation5 + $0x1], 0  ;;  %s590_s11 = smov 0   ;;  %s592_s12 = smov 0  }
   0x7   :  { %s594_s13 = smov 0   ;;  %s596_s14 = smov 0  }
   0x8 LB: > { %s611_s0 = sadd.s32 4294967295, %s570_s14   ;;  %s402_s15 = sadd.s32 4294967294, %s570_s14   ;;  %s570_s14 = sphi %s596_s14, %s736_s14   ;;  %s566_s13 = sphi %s594_s13, %s735_s13   ;;  %s562_s12 = sphi %s592_s12, %s734_s12   ;;  %s558_s11 = sphi %s590_s11, %s733_s11  }
   0x9   : > { %s615_s16 = sadd.s32 1, %s570_s14   ;;  %s48_s17 = sadd.s32 1, %s566_s13 }
   0xa   : > { %s45_s18 = ssub.s32 %s570_s14, %s615_s16  ;;  %p55_p0 = scmp.ne.s32.totalorder %s566_s13, %s562_s12 }
   0xb   : > { %p46_p1 = scmp.eq.s32.totalorder %s45_s18, 0  ;;  %p56_p2 = scmp.eq.s32.totalorder %s570_s14, 0 }
   0xc   : > { %p61_p3 = scmp.ne.s32.totalorder %s562_s12, %s558_s11  ;;  %p62_p4 = scmp.eq.s32.totalorder %s611_s0, 0 }
   0xd   : > { %s627_s19 = scalar_select %p46_p1, %s566_s13, %s48_s17  }
   0xe   : > { %p629_p5 = por %p56_p2, %p55_p0  ;;  %p633_p6 = por %p62_p4, %p61_p3 }
   0xf   : > { %p85_p7 = scmp.eq.s32.totalorder %s611_s0, 1  ;;  %p91_p8 = scmp.eq.s32.totalorder %s402_s15, 1 }
  0x10   : > { %p436_p10 = scmp.lt.s32.totalorder %s570_s14, 2  ;;  %s114_s24 = sand.u32 1, %s566_s13  }
  0x11   : > { %p640_p11 = por %p85_p7, %p55_p0  ;;  %p644_p12 = por %p91_p8, %p61_p3 }
  0x12   : > { %s420_s25 = sshll.u32 %s570_s14, 3  ;;  %s405_s26 = sshll.u32 %s114_s24, 3 }
  0x13   : > { %s123_s29 = scalar_lea.hbm %s725_s1, %s420_s25  ;;  %s118_s3 = scalar_lea.vmem [#allocation3], %s405_s26 }
  0x14   : > { %s125_s30 = sshll.u32 %s123_s29, 4  ;;  %s127_s4 = sshll.u32 %s118_s3, 4  ;;  %s126_s30 = int_to_ptr.hbm [resolvable:$true] %s125_s30  ;;  %s128_s4 = int_to_ptr.vmem [resolvable:$true] %s127_s4 }
  0x15   : > { %p655_p13 = pnand %p436_p10, %p629_p5  ;;  %p408_p0 = scmp.ge.s32.totalorder %s570_s14, 1 }
  0x16   : > { %p132_p1 = scmp.lt.s32.totalorder %s570_s14, 3  ;;  %s115_s6 = scalar_lea.sflag [#allocation4], %s114_s24 }
  0x17   : > { %s474_s7 = sshra.s32 %s126_s30, 4  ;;  %p478_p3 = pneg %p655_p13  ;;  %s475_s7 = int_to_ptr.hbm [resolvable:$true] %s474_s7 }
  0x18   : > { %s476_s8 = scalar_lea.hbm %s475_s7, 8  ;;  %s481_s15 = scalar_lea.hbm %s725_s1, 16 }
  0x19   : > { %p477_p2 = scmp.ne.s32.totalorder %s475_s7, %s476_s8  ;;  %p482_p5 = scmp.lt.s32.totalorder %s475_s7, %s725_s1 }
  0x1a   : > { %p483_p8 = scmp.lt.s32.totalorder %s481_s15, %s476_s8 }
  0x1b   : > { %p479_p4 = pnand %p478_p3, %p477_p2 }
  0x1c   : > { %p484_p10 = por %p483_p8, %p482_p5 }
  0x1d   : > { %p480_p7 = pneg %p479_p4 }
  0x1f   : > { %p485_p9 = pnand %p484_p10, %p480_p7 }
  0x21   : > { %488 = shalt.err (!%p485_p9)
}
  0x22   : > { %431 = dma.hbm_to_vmem [thread:$0]  (!%p655_p13), %s126_s30, 128, %s128_s4, %s115_s6  }
  0x23   : > { %p133_p2 = pnand %p408_p0, %p132_p1 }
  0x24   : > { %s676_s20 = sand.u32 (!%p133_p2), 1, %s562_s12  }
  0x25   : > { %136 = sbr.rel (%p133_p2) target bundleno = 716 (0x2cc), region = 28  ;;  %s409_s24 = sshll.u32 (!%p133_p2), %s676_s20, 3 }
  0x26   : > { %s139_s25 = scalar_lea.sflag (!%p133_p2), [#allocation4], %s676_s20  ;;  %s142_s26 = scalar_lea.vmem (!%p133_p2), [#allocation3], %s409_s24 }
  0x2a   : > { %549 = dma.done.wait (%p633_p6), %s139_s25, 128  }
  0x2b   : > { %551 = vsyncadd (%p633_p6), %s139_s25, 4294967168  ;;  %v164_v1 = vld [vmem:[%s142_s26] sm:$0xff]  ;;  %vm216_vm0 = vcmask 27648   ;;  %vm252_vm1 = vcmask 1043456   ;;  %v297_v20 = vld [vmem:[#allocation2] sm:$0x1] }
  0x2c   : > { %166 = vst [vmem:[#allocation1] ss:$2 sm:$0xff] %v164_v1  ;;  %vm248_vm6 = vcmask 31744   ;;  %s421_s27 = sshll.u32 %s611_s0, 3  ;;  %s163_s3 = scalar_lea.vmem [#allocation6], %s409_s24 }
  0x2d   : > { %422 = vpush %v297_v20  ;;  %s327_s30 = scalar_lea.hbm %s726_s2, %s421_s27  ;;  %s329_s4 = sshll.u32 %s163_s3, 4  ;;  %s330_s4 = int_to_ptr.vmem [resolvable:$true] %s329_s4 }
  0x2e   : > { %s331_s5 = sshll.u32 %s327_s30, 4  ;;  %s316_s0 = scalar_lea.sflag [#allocation5], %s676_s20  ;;  %s332_s5 = int_to_ptr.hbm [resolvable:$true] %s331_s5 }
  0x2f   : > { %s518_s6 = sshra.s32 %s332_s5, 4  ;;  %s524_s10 = scalar_lea.hbm %s726_s2, 16  ;;  %s519_s6 = int_to_ptr.hbm [resolvable:$true] %s518_s6 }
  0x30   : > { %s520_s7 = scalar_lea.hbm %s519_s6, 8  ;;  %p525_p0 = scmp.lt.s32.totalorder %s519_s6, %s726_s2 }
  0x31   : > { %p521_p6 = scmp.ne.s32.totalorder %s519_s6, %s520_s7  ;;  %p526_p1 = scmp.lt.s32.totalorder %s524_s10, %s520_s7 }
  0x33   : > { %v167_v2 = vld.sshfl [vmem:[#allocation1] sm:$0xff pattern:$0x75316420]  ;;  %v168_v3 = vld.sshfl [vmem:[#allocation1 + $0x8] sm:$0xff pattern:$0x75316420]  ;;  %p522_p9 = pnand %p521_p6, %p640_p11  ;;  %p527_p3 = por %p526_p1, %p525_p0 }
  0x34   : > { %171 = vst [vmem:[#allocation1] ss:$2 sm:$0xff] %v164_v1 }
  0x35   : > { %p523_p13 = pneg %p522_p9 }
  0x37   : > { %p528_p4 = pnand %p527_p3, %p523_p13 }
  0x3b   : > { %v172_v4 = vld.sshfl [vmem:[#allocation1] sm:$0xff pattern:$0x75316420]  ;;  %v173_v5 = vld.sshfl [vmem:[#allocation1 + $0x8] sm:$0xff pattern:$0x75316420] }
  0x3c   : > { %191 = vmatpush.xpose.msra.mxu0 %v172_v4  ;;  %211 = vmatpush.xpose.msra.mxu1 %v173_v5  ;;  %245 = vst [vmem:[#allocation1] ss:$2 sm:$0xff] %v164_v1 }
  0x3f   : > { %192 = vmatmul.f32.vlgmr.msra.gmra.mxu0 %v167_v2  ;;  %212 = vmatmul.f32.vlgmr.msra.gmra.mxu1 %v168_v3 }
  0x43   : > { %v246_v18 = vld.sshfl [vmem:[#allocation1] sm:$0xff pattern:$0x75316420]  ;;  %v247_v19 = vld.sshfl [vmem:[#allocation1 + $0x8] sm:$0xff pattern:$0x75316420] }
  0x44   : > { %411 = vmatpush.msk.msra.mxu2 %vm252_vm1, %v246_v18  ;;  %413 = vmatpush.msk.msra.mxu3 %vm252_vm1, %v247_v19  ;;  %302 = vst [vmem:[#allocation1] ss:$2 sm:$0xff] %v164_v1 }
  0x4b   : > { %v304_v36 = vld.sshfl [vmem:[#allocation1 + $0x8] sm:$0xff pattern:$0x75316420]  ;;  %v303_v39 = vld.sshfl [vmem:[#allocation1] sm:$0xff pattern:$0x75316420] }
  0x5e   : > { %s423_s21 = spop %422 }
  0x5f   : > { %v299_v33 = vstv %s423_s21 }
  0xbc   : > { %v193_v6 = vpop.f32.mrf.mxu0  ;;  %v213_v7 = vpop.f32.mrf.mxu1 }
  0xbd   : > { %v214_v8 = vadd.f32 %v213_v7, %v193_v6 }
  0xbf   : > { %v217_v9 = vsel %vm216_vm0, %v214_v8, -inf }
  0xc0   : > { %218 = vmax.xlane.f32.xlu0 %v217_v9 }
 0x133   : > { %v219_v10 = vpop.xlane.xlu0 %218 }
 0x134   : > { %v220_v11 = vsub.f32 %v219_v10, %v214_v8 }
 0x136   : > { %v221_v12 = vsel %vm216_vm0, %v220_v11, -inf }
 0x137   : > { %222 = vmax.xlane.f32.xlu0 %v221_v12 }
 0x1aa   : > { %v223_v13 = vpop.xlane.xlu0 %222 }
 0x1ab   : > { %v224_v14 = vsub.f32 %v220_v11, %v223_v13 }
 0x1ad   : > { %v225_v15 = vmul.f32 1.442695, %v224_v14 }
 0x1af   : > { %470 = vpow2.f32 %v225_v15 }
 0x1b5   : > { %v471_v16 = vpop.eup %470 }
 0x1b6   : > { %v227_v17 = vsel %vm216_vm0, %v471_v16, 0.0 }
 0x1b7   : > { %228 = vadd.xlane.f32.xlu1 %v227_v17 }
 0x22a   : > { %v229_v21 = vpop.xlane.xlu1 %228 }
 0x22b   : > { %472 = vrcp.f32 %v229_v21  ;;  %v241_v25 = vand.u32 2147483648, %v229_v21  ;;  %v239_v27 = vand.u32 2147483647, %v229_v21  ;;  %vm235_vm3 = vweird.f32 %v229_v21 }
 0x22d   : > { %v242_v29 = vor.u32 1.1754944e-38, %v241_v25  ;;  %vm240_vm5 = vcmp.eq.f32.partialorder %v239_v27, 8.507059e+37 }
 0x231   : > { %v473_v22 = vpop.eup %472 }
 0x232   : > { %v231_v23 = vmul.f32 %v473_v22, %v229_v21  ;;  %vm236_vm2 = vweird.f32 %v473_v22 }
 0x233   : > { %vm237_vm4 = vmor %vm235_vm3, %vm236_vm2 }
 0x234   : > { %v232_v24 = vsub.f32 1.0, %v231_v23 }
 0x236   : > { %v233_v26 = vmul.f32 %v473_v22, %v232_v24 }
 0x238   : > { %v234_v28 = vadd.f32 %v473_v22, %v233_v26 }
 0x23a   : > { %v238_v30 = vsel %vm237_vm4, %v473_v22, %v234_v28 }
 0x23b   : > { %v243_v31 = vsel %vm240_vm5, %v242_v29, %v238_v30 }
 0x23c   : > { %v244_v32 = vmul.f32 %v471_v16, %v243_v31 }
 0x23e   : > { %412 = vmatmul.msk.f32.vlgmr.msra.gmra.mxu2 %vm248_vm6, %v244_v32  ;;  %414 = vmatmul.msk.f32.vlgmr.msra.gmra.mxu3 %vm248_vm6, %v244_v32 }
 0x2c1   : > { %v274_v34 = vpop.f32.mrf.mxu2  ;;  %v294_v35 = vpop.f32.mrf.mxu3 }
 0x2c2   : > { %v300_v37 = vmul.f32 %v299_v33, %v274_v34  ;;  %v301_v38 = vmul.f32 %v299_v33, %v294_v35 }
 0x2c4   : > { %v308_v40 = vadd.f32 %v304_v36, %v301_v38  ;;  %v307_v41 = vadd.f32 %v303_v39, %v300_v37 }
 0x2c6   : > { %v311_v42 = vrot.slane %v308_v40, 4 }
 0x2c8   : > { %v312_v43 = vsel %vm252_vm1, %v307_v41, %v311_v42 }
 0x2c9   : > { %314 = vst [vmem:[%s163_s3] sm:$0xff] %v312_v43 }
 0x2ca   : > { %531 = shalt.err (!%p528_p4)
}
 0x2cb   : > { %426 = dma.vmem_to_hbm [thread:$0]  (%p640_p11), %s330_s4, 128, %s332_s5, %s316_s0  }
 0x2cc PF: > { %s343_s18 = sand.u32 1, %s558_s11   ;;  %p732_p7 = scmp.ge.s32.totalorder %s570_s14, 2 }
 0x2cd   : > { %s344_s20 = scalar_lea.sflag [#allocation5], %s343_s18 }
 0x2ce   : > { %p433_p5 = pnand %p732_p7, %p644_p12 }
 0x2d0   : > { %p434_p8 = pneg %p433_p5 }
 0x2d2   : > { %553 = dma.done.wait (%p434_p8), %s344_s20, 128  }
 0x2d3   : > { %555 = vsyncadd (%p434_p8), %s344_s20, 4294967168  ;;  %p17_p10 = scmp.ge.s32.totalorder %s615_s16, 4   ;;  %s733_s11 = smov %s562_s12 }
 0x2d4   : > { %s734_s12 = smov %s566_s13  ;;  %s735_s13 = smov %s627_s19 }
 0x2d5   : > { %s736_s14 = smov %s615_s16  ;;  %19 = sbr.rel (!%p17_p10) target bundleno = 8 (0x8), region = 73 }
 0x2da   :  { %350 = vsyncpa [#allocation4], 1 }
 0x2db   :  { %352 = vsyncpa [#allocation4 + $0x1], 1 }
 0x2dc   :  { %353 = vsyncpa [#allocation5], 1 }
 0x2dd   :  { %355 = vsyncpa [#allocation5 + $0x1], 1 }

</bundles_post_ra>
